<compile_context>
chip_gen: v7x
topology: tpu7x:2x2x1
jax: 0.10.0
libtpu: 0.0.40
codegen_flags: <defaults>
</compile_context>

<pallas_src>
import functools

import numpy as np
import jax
import jax.numpy as jnp
from jax import lax
from jax.experimental import pallas as pl
from jax.experimental.pallas import tpu as pltpu

_MIB = 1 << 20
_FUSED_K_MAX_BYTES = 2 * _MIB          # fuse Rh⊗Rw into one matrix up to this size


def _round_up(x, m):
    return -(-x // m) * m


@functools.lru_cache(maxsize=1)
def _vmem_capacity_bytes():
    try:
        return int(pltpu.get_tpu_info().vmem_capacity_bytes)
    except Exception:                   # pragma: no cover - conservative fallback
        return 64 * _MIB                # v7x-sized assumption


def _interp_matrix_np(n_in: int, n_out: int) -> np.ndarray:
    """caffe InterpLayer (align-corners, pad_beg=pad_end=0) weights, (n_out, n_in) f64."""
    m = np.zeros((n_out, n_in), np.float64)
    scale = (n_in - 1) / (n_out - 1) if (n_out > 1 and n_in > 1) else 0.0
    pos = np.arange(n_out, dtype=np.float64) * scale
    lo = np.clip(np.floor(pos).astype(np.int64), 0, n_in - 1)
    hi = np.minimum(lo + 1, n_in - 1)
    w = pos - lo
    rows = np.arange(n_out)
    m[rows, lo] += 1.0 - w
    m[rows, hi] += w
    return m


# ----------------------------------------------------------------------------
# kernels
# ----------------------------------------------------------------------------
def _fused_kernel(x_ref, k_ref, o_ref, *, offsets):
    """(tp, H*W) @ (H*W, OH*OW): one lane-dense MXU matmul, f32 accumulate.

    The rescale is hoisted out of the matmul: the 127.5 scale is folded into K
    and the per-channel offset (compile-time floats) is added to the output
    block, selected by global plane index % 3."""
    r = jnp.dot(x_ref[...].astype(k_ref.dtype), k_ref[...],
                preferred_element_type=jnp.float32)
    if offsets is not None:
        tp = x_ref.shape[0]
        row = lax.broadcasted_iota(jnp.int32, (tp, 1), 0) + pl.program_id(0) * tp
        ch = row % 3
        off = jnp.where(ch == 0, offsets[0],
                        jnp.where(ch == 1, offsets[1], offsets[2]))
        r = r + off.astype(jnp.float32)
    o_ref[...] = r


def _separable_kernel(x_ref, rh_ref, rwt_ref, o_ref, *, offsets, flip, w_first):
    """Per-plane separable interp: o[p'] = Rh @ x[p] @ Rw^T (+ channel offset).

    Planes are independent, so the tp planes of a block are processed with a
    fori_loop of dense matmuls (no block-diagonal zero work).  For images the
    B,G,R flip is free: plane p is stored to the flipped slot of its triple
    (tp is kept a multiple of 3 so triples never straddle blocks)."""
    cdt = rh_ref.dtype
    tp = x_ref.shape[0]
    rh = rh_ref[...]
    rwt = rwt_ref[...]

    def one(p_src, p_dst, off):
        x = x_ref[p_src].astype(cdt)                        # (H_in, W_in)
        if w_first:
            t = jnp.dot(x, rwt, preferred_element_type=jnp.float32)
            r = jnp.dot(rh, t.astype(cdt), preferred_element_type=jnp.float32)
        else:
            t = jnp.dot(rh, x, preferred_element_type=jnp.float32)
            r = jnp.dot(t.astype(cdt), rwt, preferred_element_type=jnp.float32)
        if off:
            r = r + jnp.float32(off)
        o_ref[p_dst] = r

    if offsets is None and not flip:
        def body(p, carry):
            one(p, p, None)
            return carry
        lax.fori_loop(0, tp, body, 0)
    else:
        offs = offsets if offsets is not None else (0.0, 0.0, 0.0)

        def body(t, carry):
            for c in range(3):                              # static unroll of the triple
                p = t * 3 + c
                dst = (t * 3 + (2 - c)) if flip else p
                one(p, dst, offs[c])
            return carry
        lax.fori_loop(0, tp // 3, body, 0)


# ----------------------------------------------------------------------------
# drivers
# ----------------------------------------------------------------------------
def _fused_path(x, rh, rw, out_h, out_w, scale, offsets, flip_triples,
                cdt, in_b, budget, cap):
    p, h_in, w_in = x.shape
    hw, ohow = h_in * w_in, out_h * out_w
    if flip_triples:
        assert p % 3 == 0

    # The within-triple channel flip is not expressible at block granularity in
    # an index_map, so in this (small-plane) regime it costs one rev copy -
    # applied to whichever side is smaller.  The separable path flips for free.
    rev_input = flip_triples and hw * in_b <= ohow * 4
    rev_output = flip_triples and not rev_input
    koffs = offsets
    if rev_input:
        x = x.reshape(p // 3, 3, h_in, w_in)[:, ::-1].reshape(p, h_in, w_in)
        if offsets is not None:
            koffs = offsets[::-1]

    # interp as one baked matrix: out_flat = x_flat @ K,  K = scale * kron(Rh, Rw)^T
    k = jnp.asarray(np.kron(rh, rw).T * scale, cdt)          # (hw, ohow) constant

    # plane-block size from a per-generation VMEM budget (double-buffered x/out
    # blocks + the grid-invariant K, which is also counted double-buffered).
    per_plane = 2 * hw * in_b + 2 * ohow * 4
    avail = max(budget - 2 * hw * ohow * cdt.itemsize, 8 * per_plane)
    tp = min(max((avail // per_plane) // 8 * 8, 8), 1024)
    split = _round_up(pl.cdiv(p, 2), 8)       # >=2 grid steps helps v7x megacore
    tp = min(tp, max(split, 256))             # ...but keep MXU row blocks >=256
    if tp >= p:
        tp = p                                # full stack is always a legal block
    grid = (pl.cdiv(p, tp),)

    need = 2 * tp * hw * in_b + 2 * tp * ohow * 4 + 2 * hw * ohow * cdt.itemsize
    vmem_lim = int(min(cap * 0.9, max(32 * _MIB, need + 4 * _MIB)))

    out = pl.pallas_call(
        functools.partial(_fused_kernel, offsets=koffs),
        out_shape=jax.ShapeDtypeStruct((p, ohow), jnp.float32),
        grid=grid,
        in_specs=[
            pl.BlockSpec((tp, hw), lambda i: (i, 0)),
            # grid-invariant constant; its (double-buffered) VMEM is budgeted in
            # `need` (pl.Buffered(1) single-buffering is a further option).
            pl.BlockSpec((hw, ohow), lambda i: (0, 0)),
        ],
        out_specs=pl.BlockSpec((tp, ohow), lambda i: (i, 0)),
        compiler_params=pltpu.CompilerParams(
            dimension_semantics=("parallel",),
            vmem_limit_bytes=vmem_lim),
    )(x.reshape(p, hw), k)

    out = out.reshape(p, out_h, out_w)
    if rev_output:
        out = out.reshape(p // 3, 3, out_h, out_w)[:, ::-1].reshape(p, out_h, out_w)
    return out


def _separable_path(x, rh, rw, out_h, out_w, scale, offsets, flip_triples,
                    cdt, in_b, budget, cap):
    p, h_in, w_in = x.shape
    group = 3 if (flip_triples or offsets is not None) else 1
    assert p % group == 0

    rh_c = jnp.asarray(rh * scale, cdt)        # (out_h, h_in), scale folded in
    rwt_c = jnp.asarray(rw.T, cdt)             # (w_in, out_w)

    # contraction order: do the cheaper 1-D interp first (per-plane FLOPs)
    fl_w_first = h_in * w_in * out_w + out_h * h_in * out_w
    fl_h_first = out_h * h_in * w_in + out_h * w_in * out_w
    w_first = fl_w_first <= fl_h_first

    const_bytes = 2 * (rh_c.size + rwt_c.size) * cdt.itemsize
    per_plane = 2 * h_in * w_in * in_b + 2 * out_h * out_w * 4
    avail = max(budget - const_bytes, group * per_plane)
    tp = max(group, ((avail // per_plane) // group) * group)
    split = _round_up(pl.cdiv(p, 2), group)    # >=2 grid steps helps v7x megacore
    if split < p:
        tp = min(tp, split)
    tp = min(tp, p)
    if tp < p:                                 # keep triples whole across blocks
        tp = max(group, (tp // group) * group)
    grid = (pl.cdiv(p, tp),)

    need = tp * per_plane + const_bytes
    vmem_lim = int(min(cap * 0.9, max(32 * _MIB, need + 4 * _MIB)))

    out = pl.pallas_call(
        functools.partial(_separable_kernel, offsets=offsets,
                          flip=flip_triples, w_first=w_first),
        out_shape=jax.ShapeDtypeStruct((p, out_h, out_w), jnp.float32),
        grid=grid,
        in_specs=[
            pl.BlockSpec((tp, h_in, w_in), lambda i: (i, 0, 0)),
            pl.BlockSpec((out_h, h_in), lambda i: (0, 0)),
            pl.BlockSpec((w_in, out_w), lambda i: (0, 0)),
        ],
        out_specs=pl.BlockSpec((tp, out_h, out_w), lambda i: (i, 0, 0)),
        compiler_params=pltpu.CompilerParams(
            dimension_semantics=("parallel",),
            vmem_limit_bytes=vmem_lim),
    )(x, rh_c, rwt_c)
    # TODO(synk): when out_w < 128 this store is lane-sparse; packing 128//out_w
    # planes side-by-side along lanes would need a later layout unpack pass.
    return out


def _interp_planes(x, out_h, out_w, *, scale, offsets, flip_triples,
                   compute_dtype, method):
    """caffe-Interp-resize a stack of planes with a folded affine.

    x: (P, H_in, W_in) float (consumed as-is; bf16 inputs avoid any upcast).
    Returns (P, out_h, out_w) f32 = scale*interp(x) + offsets[plane%3],
    optionally with each consecutive channel triple reversed (B,G,R concat).
    """
    p, h_in, w_in = x.shape
    cdt = jnp.dtype(compute_dtype)
    in_b = jnp.dtype(x.dtype).itemsize
    hw, ohow = h_in * w_in, out_h * out_w

    rh = _interp_matrix_np(h_in, out_h)        # numpy f64, baked at trace time
    rw = _interp_matrix_np(w_in, out_w)

    cap = _vmem_capacity_bytes()
    budget = min(cap // 3, 48 * _MIB)          # per-step working-set target

    if method == "auto":
        method = ("fused" if hw * ohow * cdt.itemsize <= _FUSED_K_MAX_BYTES
                  else "separable")
    if method == "fused":
        return _fused_path(x, rh, rw, out_h, out_w, scale, offsets,
                           flip_triples, cdt, in_b, budget, cap)
    return _separable_path(x, rh, rw, out_h, out_w, scale, offsets,
                           flip_triples, cdt, in_b, budget, cap)


# ----------------------------------------------------------------------------
# SSL_Loss.forward (preprocessing portion)
# ----------------------------------------------------------------------------
@functools.partial(jax.jit,
                   static_argnames=("size", "mean", "compute_dtype", "method"))
def ssl_loss_forward(inp, targets, *, size, mean,
                     compute_dtype=jnp.bfloat16, method="auto"):
    """SSL_Loss.forward steps 1-3 (rescale, mean-subtract + B,G,R concat, Interp).

    inp:     (N, 3, H, W) in [-1, 1], module channel order (R, G, B).
    targets: (N, Ct, H, W).
    mean:    static 3-tuple; mean[c] is subtracted from input channel c before
             the B,G,R re-concat (exactly as the module indexes it).
    size:    static (out_h, out_w).
    compute_dtype=bf16 uses the MXU fast path (f32 accumulate); values differ
    from the f32 PyTorch reference by O(1) on the 0-255 scale - pass
    jnp.float32 for bit-faithful validation.
    Returns (output, targets_resized), both float32.
    """
    out_h, out_w = size
    n, c, h_in, w_in = inp.shape
    assert c == 3, "RGB input expected"
    nt, ct, ht, wt = targets.shape
    assert nt == n and ht == h_in and wt == w_in

    mean = tuple(float(m) for m in mean)
    # (x + 1)*127.5 - mean[c]  ==  127.5*x + (127.5 - mean[c]); bilinear interp
    # is linear with unit row sums, so the affine commutes with the resize.
    offs = tuple(0.5 * 255.0 - m for m in mean)          # per INPUT channel

    img = _interp_planes(inp.reshape(n * 3, h_in, w_in), out_h, out_w,
                         scale=0.5 * 255.0, offsets=offs, flip_triples=True,
                         compute_dtype=compute_dtype, method=method)
    tgt = _interp_planes(targets.reshape(n * ct, h_in, w_in), out_h, out_w,
                         scale=1.0, offsets=None, flip_triples=False,
                         compute_dtype=compute_dtype, method=method)

    output = img.reshape(n, 3, out_h, out_w)
    targets_r = tgt.reshape(n, ct, out_h, out_w)
    # TODO(synk): self.net.forward(output, targets); return self.net.get_loss()
    #             requires the external CaffeNet prototxt/caffemodel.
    return output, targets_r


# ----------------------------------------------------------------------------
# self-test
# ----------------------------------------------------------------------------
def _reference(inp, targets, mean, size):
    out_h, out_w = size
    _, _, h_in, w_in = inp.shape
    rh = _interp_matrix_np(h_in, out_h)
    rwt = _interp_matrix_np(w_in, out_w).T
    mean_np = np.asarray(mean, np.float64)
    pre = (np.asarray(inp, np.float64) + 1.0) * 127.5 - mean_np[None, :, None, None]
    ref_img = np.einsum("oh,nchw,wx->ncox", rh, pre[:, ::-1], rwt)
    ref_tgt = np.einsum("oh,nchw,wx->ncox", rh, np.asarray(targets, np.float64), rwt)
    return ref_img, ref_tgt


if __name__ == "__main__":
    key = jax.random.PRNGKey(0)
    k1, k2, k3, k4 = jax.random.split(key, 4)

    mean = (104.0, 117.0, 123.0)          # static module hyper-parameter
    size = (16, 16)                       # (height, width)

    inp = jax.random.uniform(k1, (2, 3, 12, 12), jnp.float32, minval=-1.0, maxval=1.0)
    targets = jax.random.uniform(k2, (2, 1, 12, 12), jnp.float32)
    ref_img, ref_tgt = _reference(inp, targets, mean, size)

    # 1) default: fused single-matmul path, bf16 MXU operands, f32 accumulate.
    out_img, out_tgt = ssl_loss_forward(inp, targets, size=size, mean=mean)
    jax.block_until_ready((out_img, out_tgt))
    assert np.allclose(np.asarray(out_img), ref_img, atol=2.0, rtol=2e-2), \
        "fused bf16 image path mismatch"
    assert np.allclose(np.asarray(out_tgt), ref_tgt, atol=5e-2, rtol=2e-2), \
        "fused bf16 target path mismatch"

    # 2) fused path, f32 compute (tight check of flip/offset plumbing).
    out_img32, out_tgt32 = ssl_loss_forward(
        inp, targets, size=size, mean=mean,
        compute_dtype=jnp.float32, method="fused")
    jax.block_until_ready((out_img32, out_tgt32))
    assert np.allclose(np.asarray(out_img32), ref_img, atol=1e-2, rtol=1e-4), \
        "fused f32 image path mismatch"
    assert np.allclose(np.asarray(out_tgt32), ref_tgt, atol=1e-3, rtol=1e-4), \
        "fused f32 target path mismatch"

    # 3) separable per-plane path (the large-image regime), f32 compute.
    out_img_s, out_tgt_s = ssl_loss_forward(
        inp, targets, size=size, mean=mean,
        compute_dtype=jnp.float32, method="separable")
    jax.block_until_ready((out_img_s, out_tgt_s))
    assert np.allclose(np.asarray(out_img_s), ref_img, atol=1e-2, rtol=1e-4), \
        "separable f32 image path mismatch"
    assert np.allclose(np.asarray(out_tgt_s), ref_tgt, atol=1e-3, rtol=1e-4), \
        "separable f32 target path mismatch"

    # 4) down-sizing case exercising the rev-on-output branch of the fused path.
    inp2 = jax.random.uniform(k3, (1, 3, 16, 16), jnp.float32, minval=-1.0, maxval=1.0)
    targets2 = jax.random.uniform(k4, (1, 2, 16, 16), jnp.float32)
    size2 = (8, 8)
    ref_img2, ref_tgt2 = _reference(inp2, targets2, mean, size2)
    out_img2, out_tgt2 = ssl_loss_forward(
        inp2, targets2, size=size2, mean=mean,
        compute_dtype=jnp.float32, method="fused")
    jax.block_until_ready((out_img2, out_tgt2))
    assert np.allclose(np.asarray(out_img2), ref_img2, atol=1e-2, rtol=1e-4), \
        "fused f32 down-size image path mismatch"
    assert np.allclose(np.asarray(out_tgt2), ref_tgt2, atol=1e-3, rtol=1e-4), \
        "fused f32 down-size target path mismatch"

    print("KERNEL_OK")
</pallas_src>

<mosaic_0001>
module attributes {stable_mosaic.version = 11 : i64} {
  func.func @_fused_kernel(%arg0: i32, %arg1: memref<6x144xf32, #tpu.memory_space<vmem>>, %arg2: memref<144x256xbf16, #tpu.memory_space<vmem>>, %arg3: memref<6x256xf32, #tpu.memory_space<vmem>>) attributes {dimension_semantics = [#tpu.dimension_semantics<parallel>], iteration_bounds = array<i64: 1>, scalar_prefetch = 0 : i64, scratch_operands = 0 : i64, tpu.core_type = #tpu.core_type<tc>, window_params = [{transform_indices = @transform_0, window_bounds = array<i64: 6, 144>}, {pipeline_mode = #tpu.pipeline_mode<synchronous>, transform_indices = @transform_1, window_bounds = array<i64: 144, 256>}, {transform_indices = @transform_2, window_bounds = array<i64: 6, 256>}]} {
    %c0 = arith.constant 0 : index
    %c0_0 = arith.constant 0 : index
    %0 = vector.load %arg1[%c0, %c0_0] : memref<6x144xf32, #tpu.memory_space<vmem>>, vector<6x144xf32>
    %1 = arith.truncf %0 : vector<6x144xf32> to vector<6x144xbf16>
    %c0_1 = arith.constant 0 : index
    %c0_2 = arith.constant 0 : index
    %2 = vector.load %arg2[%c0_1, %c0_2] : memref<144x256xbf16, #tpu.memory_space<vmem>>, vector<144x256xbf16>
    %cst = arith.constant dense<0.000000e+00> : vector<6x256xf32>
    %3 = tpu.matmul %1, %2, %cst {dimension_numbers = #tpu.dot_dimension_numbers<[1], [0], [0], [1], [0, 0, 1, 1], [], []>} : vector<6x144xbf16>, vector<144x256xbf16>, vector<6x256xf32> -> vector<6x256xf32>
    %4 = tpu.iota {dimensions = array<i32: 0>} : vector<6x1xi32>
    %c6_i32 = arith.constant 6 : i32
    %5 = arith.muli %arg0, %c6_i32 : i32
    %6 = vector.broadcast %5 : i32 to vector<6x1xi32>
    %7 = arith.addi %4, %6 : vector<6x1xi32>
    %c3_i32 = arith.constant 3 : i32
    %c0_i32 = arith.constant 0 : i32
    %8 = arith.cmpi eq, %c3_i32, %c0_i32 : i32
    %c1_i32 = arith.constant 1 : i32
    %9 = arith.select %8, %c1_i32, %c3_i32 : i32
    %10 = vector.broadcast %9 : i32 to vector<6x1xi32>
    %11 = arith.remsi %7, %10 : vector<6x1xi32>
    %c0_i32_3 = arith.constant 0 : i32
    %12 = vector.broadcast %c0_i32_3 : i32 to vector<6x1xi32>
    %13 = arith.cmpi ne, %11, %12 : vector<6x1xi32>
    %c0_i32_4 = arith.constant 0 : i32
    %14 = vector.broadcast %c0_i32_4 : i32 to vector<6x1xi32>
    %15 = arith.cmpi slt, %11, %14 : vector<6x1xi32>
    %c0_i32_5 = arith.constant 0 : i32
    %16 = arith.cmpi slt, %9, %c0_i32_5 : i32
    %17 = vector.broadcast %16 : i1 to vector<6x1xi1>
    %18 = vector.broadcast %17 : vector<6x1xi1> to vector<6x1xi1>
    %19 = arith.xori %15, %18 : vector<6x1xi1>
    %20 = arith.andi %19, %13 : vector<6x1xi1>
    %21 = vector.broadcast %9 : i32 to vector<6x1xi32>
    %22 = arith.addi %11, %21 : vector<6x1xi32>
    %23 = arith.select %20, %22, %11 : vector<6x1xi1>, vector<6x1xi32>
    %c0_i32_6 = arith.constant 0 : i32
    %24 = vector.broadcast %c0_i32_6 : i32 to vector<6x1xi32>
    %25 = arith.cmpi eq, %23, %24 : vector<6x1xi32>
    %c1_i32_7 = arith.constant 1 : i32
    %26 = vector.broadcast %c1_i32_7 : i32 to vector<6x1xi32>
    %27 = arith.cmpi eq, %23, %26 : vector<6x1xi32>
    %cst_8 = arith.constant 1.050000e+01 : f32
    %cst_9 = arith.constant 2.350000e+01 : f32
    %28 = vector.broadcast %cst_8 : f32 to vector<6x1xf32>
    %29 = vector.broadcast %cst_9 : f32 to vector<6x1xf32>
    %30 = arith.select %27, %28, %29 : vector<6x1xi1>, vector<6x1xf32>
    %cst_10 = arith.constant 4.500000e+00 : f32
    %31 = vector.broadcast %cst_10 : f32 to vector<6x1xf32>
    %32 = arith.select %25, %31, %30 : vector<6x1xi1>, vector<6x1xf32>
    %33 = vector.broadcast %32 : vector<6x1xf32> to vector<6x256xf32>
    %34 = arith.addf %3, %33 : vector<6x256xf32>
    %c0_11 = arith.constant 0 : index
    %c0_12 = arith.constant 0 : index
    %35 = vector.load %arg3[%c0_11, %c0_12] : memref<6x256xf32, #tpu.memory_space<vmem>>, vector<6x256xf32>
    tpu.vector_store %arg3[%c0_11, %c0_12], %34 {strides = array<i32>} : memref<6x256xf32, #tpu.memory_space<vmem>>, vector<6x256xf32>,
    return
  }
  func.func @transform_0(%arg0: i32) -> (i32, i32) {
    %c0_i32 = arith.constant 0 : i32
    %c0_i32_0 = arith.constant 0 : i32
    return %arg0, %c0_i32 : i32, i32
  }
  func.func @transform_1(%arg0: i32) -> (i32, i32) {
    %c0_i32 = arith.constant 0 : i32
    %c0_i32_0 = arith.constant 0 : i32
    %c0_i32_1 = arith.constant 0 : i32
    return %c0_i32, %c0_i32_0 : i32, i32
  }
  func.func @transform_2(%arg0: i32) -> (i32, i32) {
    %c0_i32 = arith.constant 0 : i32
    %c0_i32_0 = arith.constant 0 : i32
    return %arg0, %c0_i32 : i32, i32
  }
}

module attributes {stable_mosaic.version = 11 : i64} {
  func.func @_fused_kernel(%arg0: i32, %arg1: memref<2x144xf32, #tpu.memory_space<vmem>>, %arg2: memref<144x256xbf16, #tpu.memory_space<vmem>>, %arg3: memref<2x256xf32, #tpu.memory_space<vmem>>) attributes {dimension_semantics = [#tpu.dimension_semantics<parallel>], iteration_bounds = array<i64: 1>, scalar_prefetch = 0 : i64, scratch_operands = 0 : i64, tpu.core_type = #tpu.core_type<tc>, window_params = [{transform_indices = @transform_0, window_bounds = array<i64: 2, 144>}, {pipeline_mode = #tpu.pipeline_mode<synchronous>, transform_indices = @transform_1, window_bounds = array<i64: 144, 256>}, {transform_indices = @transform_2, window_bounds = array<i64: 2, 256>}]} {
    %c0 = arith.constant 0 : index
    %c0_0 = arith.constant 0 : index
    %0 = vector.load %arg1[%c0, %c0_0] : memref<2x144xf32, #tpu.memory_space<vmem>>, vector<2x144xf32>
    %1 = arith.truncf %0 : vector<2x144xf32> to vector<2x144xbf16>
    %c0_1 = arith.constant 0 : index
    %c0_2 = arith.constant 0 : index
    %2 = vector.load %arg2[%c0_1, %c0_2] : memref<144x256xbf16, #tpu.memory_space<vmem>>, vector<144x256xbf16>
    %cst = arith.constant dense<0.000000e+00> : vector<2x256xf32>
    %3 = tpu.matmul %1, %2, %cst {dimension_numbers = #tpu.dot_dimension_numbers<[1], [0], [0], [1], [0, 0, 1, 1], [], []>} : vector<2x144xbf16>, vector<144x256xbf16>, vector<2x256xf32> -> vector<2x256xf32>
    %c0_3 = arith.constant 0 : index
    %c0_4 = arith.constant 0 : index
    %4 = vector.load %arg3[%c0_3, %c0_4] : memref<2x256xf32, #tpu.memory_space<vmem>>, vector<2x256xf32>
    tpu.vector_store %arg3[%c0_3, %c0_4], %3 {strides = array<i32>} : memref<2x256xf32, #tpu.memory_space<vmem>>, vector<2x256xf32>,
    return
  }
  func.func @transform_0(%arg0: i32) -> (i32, i32) {
    %c0_i32 = arith.constant 0 : i32
    %c0_i32_0 = arith.constant 0 : i32
    return %arg0, %c0_i32 : i32, i32
  }
  func.func @transform_1(%arg0: i32) -> (i32, i32) {
    %c0_i32 = arith.constant 0 : i32
    %c0_i32_0 = arith.constant 0 : i32
    %c0_i32_1 = arith.constant 0 : i32
    return %c0_i32, %c0_i32_0 : i32, i32
  }
  func.func @transform_2(%arg0: i32) -> (i32, i32) {
    %c0_i32 = arith.constant 0 : i32
    %c0_i32_0 = arith.constant 0 : i32
    return %arg0, %c0_i32 : i32, i32
  }
}

</mosaic_0001>

<bundles_post_ra>
// kernel: ssl_loss_forward.2
= control target key start
LH: loop header
LB: loop body
LE: loop exit
PB: predicated region body
PF: predicated region fallthrough
CT: control target
= control target key end

     0   :  { %vm149_vm0 = vcmask 130048   ;;  %v34_v22 = vlaneseq  ;;  %v249_v31 = vmov 23.5   ;;  %s335_s1 = inlined_call_operand.vmem [shape: bf16[144,256], index: 1, kind: input, shape index: {}]   ;;  %s336_s0 = inlined_call_operand.vmem [shape: f32[6,144], index: 0, kind: input, shape index: {}]   ;;  %s337_s2 = inlined_call_operand.vmem [shape: f32[6,256], index: 2, kind: output, shape index: {}]  }
   0x1   :  { %v222_v0 = vld [vmem:[%s335_s1 + $0x4] ss:$8 sps:$4 sm:$0xff]   ;;  %v224_v1 = vld [vmem:[%s335_s1] ss:$8 sps:$4 sm:$0xff]   ;;  %v225_v2 = vld [vmem:[%s335_s1 + $0x14] ss:$8 sps:$4 sm:$0xff]  }
   0x2   :  { %153 = vmatprep.subr.bf16.mxu0 %v222_v0  ;;  %v227_v3 = vld [vmem:[%s335_s1 + $0x10] ss:$8 sps:$4 sm:$0xff]   ;;  %v228_v4 = vld [vmem:[%s335_s1 + $0x24] ss:$8 sps:$4 sm:$0xff]   ;;  %v230_v5 = vld [vmem:[%s335_s1 + $0x20] ss:$8 sps:$4 sm:$0xff]  }
   0x3   :  { %154 = vmatpush1.bf16.msra.mxu0 %v224_v1  ;;  %v231_v6 = vld [vmem:[%s335_s1 + $0x34] ss:$8 sps:$4 sm:$0xff]   ;;  %v233_v7 = vld [vmem:[%s335_s1 + $0x30] ss:$8 sps:$4 sm:$0xff]   ;;  %v234_v8 = vld [vmem:[%s335_s1 + $0x44] ss:$8 sps:$4 sm:$0xff]  }
   0x4   :  { %155 = vmatprep.subr.bf16.mxu0 %v225_v2  ;;  %v13_v9 = vld [vmem:[%s336_s0 + $0x8] sm:$0x3f]  ;;  %v237_v12 = vld [vmem:[%s335_s1 + $0x54] ss:$8 sps:$4 sm:$0xff]   ;;  %v239_v13 = vld [vmem:[%s335_s1 + $0x50] ss:$8 sps:$4 sm:$0xff]  }
   0x5   :  { %v15_v10 = vpack.c.bf16 %v13_v9, %v13_v9  ;;  %v236_v11 = vld [vmem:[%s335_s1 + $0x40] ss:$8 sps:$4 sm:$0xff]   ;;  %v240_v14 = vld [vmem:[%s335_s1 + $0x64] ss:$8 sps:$4 sm:$0xff]   ;;  %v243_v16 = vld [vmem:[%s335_s1 + $0x74] ss:$8 sps:$4 sm:$0xff]  }
   0x6   :  { %v242_v15 = vld [vmem:[%s335_s1 + $0x60] ss:$8 sps:$4 sm:$0xff]   ;;  %v245_v17 = vld [vmem:[%s335_s1 + $0x70] ss:$8 sps:$4 sm:$0xff]   ;;  %v246_v18 = vld [vmem:[%s335_s1 + $0x84] ss:$8 sps:$4 sm:$0xff]  }
   0x7   :  { %156 = vmatpush1.bf16.msra.mxu0 %v227_v3  ;;  %218 = vmatprep.mubr.msk.bf16.mxu0 %vm149_vm0, %v15_v10  ;;  %v248_v19 = vld [vmem:[%s335_s1 + $0x80] ss:$8 sps:$4 sm:$0xff]   ;;  %v35_v23 = vshrl.u32 %v34_v22, 7 }
   0x8   :  { %157 = vmatprep.subr.bf16.mxu0 %v228_v4  ;;  %v12_v20 = vld [vmem:[%s336_s0] sm:$0x3f] }
   0x9   :  { %v14_v21 = vpack.c.bf16 %v12_v20, %v12_v20  ;;  %v325_v24 = vmul.u32.u64.low 2863311531, %v35_v23  ;;  %v326_v25 = vmul.u32.u64.high 2863311531, %v35_v23, %v325_v24 }
   0xb   :  { %158 = vmatpush1.bf16.msra.mxu0 %v230_v5  ;;  %v45_v26 = vshrl.u32 %v326_v25, 1 }
   0xc   :  { %159 = vmatprep.subr.bf16.mxu0 %v231_v6 }
   0xd   :  { %v46_v27 = vmul.u32 3, %v45_v26 }
   0xf   :  { %160 = vmatpush1.bf16.msra.mxu0 %v233_v7  ;;  %v47_v28 = vsub.s32 %v35_v23, %v46_v27 }
  0x10   :  { %161 = vmatprep.subr.bf16.mxu0 %v234_v8 }
  0x11   :  { %vm50_vm1 = vcmp.ne.s32.totalorder %v47_v28, 0  ;;  %vm51_vm2 = vcmp.lt.s32.totalorder %v47_v28, 0  ;;  %v53_v29 = vadd.s32 3, %v47_v28 }
  0x12   :  { %vm52_vm3 = vmand %vm51_vm2, %vm50_vm1 }
  0x13   :  { %162 = vmatpush1.bf16.msra.mxu0 %v236_v11  ;;  %v54_v30 = vsel %vm52_vm3, %v53_v29, %v47_v28 }
  0x14   :  { %163 = vmatprep.subr.bf16.mxu0 %v237_v12  ;;  %vm56_vm4 = vcmp.eq.s32.totalorder %v54_v30, 1  ;;  %vm55_vm5 = vcmp.eq.s32.totalorder %v54_v30, 0 }
  0x15   :  { %v57_v32 = vsel %vm56_vm4, 10.5, %v249_v31 }
  0x16   :  { %v58_v33 = vsel %vm55_vm5, 4.5, %v57_v32 }
  0x17   :  { %164 = vmatpush1.bf16.msra.mxu0 %v239_v13 }
  0x18   :  { %165 = vmatprep.subr.bf16.mxu0 %v240_v14 }
  0x1b   :  { %166 = vmatpush1.bf16.msra.mxu0 %v242_v15 }
  0x1c   :  { %167 = vmatprep.subr.bf16.mxu0 %v243_v16 }
  0x1f   :  { %168 = vmatpush1.bf16.msra.mxu0 %v245_v17 }
  0x20   :  { %169 = vmatprep.subr.bf16.mxu0 %v246_v18 }
  0x23   :  { %170 = vmatpush1.bf16.msra.mxu0 %v248_v19 }
  0x26   :  { %186 = vmatmul.mubr.bf16.vlgmr.msra.gmra.mrb[0].mxu0 %v14_v21 }
  0xf9   :  { %v187_v34 = vpop.f32.mrb[0].mxu0 }
  0xfa   :  { %v188_v35 = vadd.f32 %v187_v34, %v58_v33  ;;  %v189_v36 = vpop.f32.mrb[1].mxu0 }
  0xfb   :  { %v190_v37 = vadd.f32 %v189_v36, %v58_v33  ;;  %v191_v38 = vpop.f32.mrb[2].mxu0 }
  0xfc   :  { %194 = vst [vmem:[%s337_s2] sm:$0x3f] %v188_v35  ;;  %v192_v39 = vpop.f32.mrb[3].mxu0 }
  0xfd   :  { %195 = vst [vmem:[%s337_s2 + $0x8] sm:$0x3f] %v190_v37 }

// kernel: ssl_loss_forward.3
= control target key start
LH: loop header
LB: loop body
LE: loop exit
PB: predicated region body
PF: predicated region fallthrough
CT: control target
= control target key end

     0   :  { %vm134_vm0 = vcmask 130048   ;;  %s318_s1 = inlined_call_operand.vmem [shape: bf16[144,256], index: 1, kind: input, shape index: {}]   ;;  %s319_s0 = inlined_call_operand.vmem [shape: f32[2,144], index: 0, kind: input, shape index: {}]   ;;  %s320_s2 = inlined_call_operand.vmem [shape: f32[2,256], index: 2, kind: output, shape index: {}]  }
   0x1   :  { %v216_v0 = vld [vmem:[%s318_s1 + $0x4] ss:$8 sps:$4 sm:$0xff]   ;;  %v218_v1 = vld [vmem:[%s318_s1] ss:$8 sps:$4 sm:$0xff]   ;;  %v219_v2 = vld [vmem:[%s318_s1 + $0x14] ss:$8 sps:$4 sm:$0xff]  }
   0x2   :  { %138 = vmatprep.subr.bf16.mxu0 %v216_v0  ;;  %v221_v3 = vld [vmem:[%s318_s1 + $0x10] ss:$8 sps:$4 sm:$0xff]   ;;  %v222_v4 = vld [vmem:[%s318_s1 + $0x24] ss:$8 sps:$4 sm:$0xff]   ;;  %v224_v5 = vld [vmem:[%s318_s1 + $0x20] ss:$8 sps:$4 sm:$0xff]  }
   0x3   :  { %139 = vmatpush1.bf16.msra.mxu0 %v218_v1  ;;  %v225_v6 = vld [vmem:[%s318_s1 + $0x34] ss:$8 sps:$4 sm:$0xff]   ;;  %v227_v7 = vld [vmem:[%s318_s1 + $0x30] ss:$8 sps:$4 sm:$0xff]   ;;  %v228_v8 = vld [vmem:[%s318_s1 + $0x44] ss:$8 sps:$4 sm:$0xff]  }
   0x4   :  { %140 = vmatprep.subr.bf16.mxu0 %v219_v2  ;;  %v195_v9 = vld.sshfl [vmem:[%s319_s0] sm:$0x33 pattern:$0x76325410]  ;;  %v231_v13 = vld [vmem:[%s318_s1 + $0x54] ss:$8 sps:$4 sm:$0xff]  }
   0x5   :  { %v21_v10 = vcombine.high %v195_v9, %v195_v9  ;;  %v230_v11 = vld [vmem:[%s318_s1 + $0x40] ss:$8 sps:$4 sm:$0xff]   ;;  %v233_v14 = vld [vmem:[%s318_s1 + $0x50] ss:$8 sps:$4 sm:$0xff]   ;;  %v234_v15 = vld [vmem:[%s318_s1 + $0x64] ss:$8 sps:$4 sm:$0xff]   ;;  %v24_v21 = vpack.c.bf16 %v195_v9, %v195_v9 }
   0x6   :  { %v236_v16 = vld [vmem:[%s318_s1 + $0x60] ss:$8 sps:$4 sm:$0xff]   ;;  %v237_v17 = vld [vmem:[%s318_s1 + $0x74] ss:$8 sps:$4 sm:$0xff]   ;;  %v239_v18 = vld [vmem:[%s318_s1 + $0x70] ss:$8 sps:$4 sm:$0xff]  }
   0x7   :  { %141 = vmatpush1.bf16.msra.mxu0 %v221_v3  ;;  %v25_v12 = vpack.c.bf16 %v21_v10, %v21_v10  ;;  %v240_v19 = vld [vmem:[%s318_s1 + $0x84] ss:$8 sps:$4 sm:$0xff]   ;;  %v242_v20 = vld [vmem:[%s318_s1 + $0x80] ss:$8 sps:$4 sm:$0xff]  }
   0x8   :  { %142 = vmatprep.subr.bf16.mxu0 %v222_v4 }
   0x9   :  { %214 = vmatprep.mubr.msk.bf16.mxu0 %vm134_vm0, %v25_v12 }
   0xb   :  { %143 = vmatpush1.bf16.msra.mxu0 %v224_v5 }
   0xc   :  { %144 = vmatprep.subr.bf16.mxu0 %v225_v6 }
   0xf   :  { %145 = vmatpush1.bf16.msra.mxu0 %v227_v7 }
  0x10   :  { %146 = vmatprep.subr.bf16.mxu0 %v228_v8 }
  0x13   :  { %147 = vmatpush1.bf16.msra.mxu0 %v230_v11 }
  0x14   :  { %148 = vmatprep.subr.bf16.mxu0 %v231_v13 }
  0x17   :  { %149 = vmatpush1.bf16.msra.mxu0 %v233_v14 }
  0x18   :  { %150 = vmatprep.subr.bf16.mxu0 %v234_v15 }
  0x1b   :  { %151 = vmatpush1.bf16.msra.mxu0 %v236_v16 }
  0x1c   :  { %152 = vmatprep.subr.bf16.mxu0 %v237_v17 }
  0x1f   :  { %153 = vmatpush1.bf16.msra.mxu0 %v239_v18 }
  0x20   :  { %154 = vmatprep.subr.bf16.mxu0 %v240_v19 }
  0x23   :  { %155 = vmatpush1.bf16.msra.mxu0 %v242_v20 }
  0x26   :  { %171 = vmatmul.mubr.bf16.vlgmr.msra.gmra.mrb[0].mxu0 %v24_v21 }
  0xf9   :  { %v172_v22 = vpop.f32.mrb[0].mxu0 }
  0xfa   :  { %v174_v23 = vpop.f32.mrb[1].mxu0 }
  0xfb   :  { %v181_v24 = vcombine.low %v172_v22, %v174_v23  ;;  %v176_v25 = vpop.f32.mrb[2].mxu0 }
  0xfc   :  { %v177_v26 = vpop.f32.mrb[3].mxu0 }
  0xfd   :  { %215 = vst.sshfl [vmem:[%s320_s2] sm:$0x33 pattern:$0x76325410] %v181_v24 }

</bundles_post_ra>
